<compile_context>
chip_gen: v7x
topology: tpu7x:2x2x1
jax: 0.10.0
libtpu: 0.0.40
codegen_flags: <defaults>
</compile_context>

<pallas_src>
import functools

import jax
import jax.numpy as jnp
from jax.experimental import pallas as pl
from jax.experimental.pallas import tpu as pltpu

_LANE = 128


def _transform_points_kernel(trans_ref, pts_ref, out_ref):
    # trans_ref: SMEM (B, (D+1)*(D+1)) float32, row-major trans_01[b]
    # pts_ref:   VMEM (1, D, N_TILE)  points, lane-dense over N
    # out_ref:   VMEM (1, D, N_TILE)
    b = pl.program_id(0)
    d = out_ref.shape[1]
    dp1 = d + 1

    # Upcast once; all FMAs run in f32 on the VPU.
    pts = pts_ref[0].astype(jnp.float32)                  # (D, N_TILE)
    rows = [pts[j:j + 1, :] for j in range(d)]            # D x (1, N_TILE)

    def t(i, j):                                          # scalar read from SMEM
        return trans_ref[b, i * dp1 + j]

    # Homogeneous coordinate: w = sum_j T[D,j] * p[j] + T[D,D]
    w = rows[0] * t(d, 0) + t(d, d)
    for j in range(1, d):
        w = w + rows[j] * t(d, j)
    # Exact reciprocal (EUP); approx=True would change numerics (~2^-12 rel).
    inv_w = pl.reciprocal(w)

    out_rows = []
    for i in range(d):
        acc = rows[0] * t(i, 0) + t(i, d)                 # + translation column
        for j in range(1, d):
            acc = acc + rows[j] * t(i, j)
        out_rows.append(acc * inv_w)

    out_ref[0] = jnp.concatenate(out_rows, axis=0).astype(out_ref.dtype)


@functools.partial(jax.jit, static_argnames=("max_tile",))
def transform_points(trans_01: jax.Array, points_1: jax.Array, *,
                     max_tile: int = 4096) -> jax.Array:
    """Pallas equivalent of tgm.transform_points.

    trans_01: (B, D+1, D+1), points_1: (B, N, D) -> (B, N, D)
    """
    if trans_01.shape[0] != points_1.shape[0]:
        raise ValueError("Input batch size must be the same for both tensors")
    if trans_01.shape[-1] != points_1.shape[-1] + 1:
        raise ValueError("Last input dimensions must differ by one unit")

    B, N, D = points_1.shape
    Dp1 = D + 1

    n_tile = min(pl.cdiv(N, _LANE) * _LANE, max_tile)     # lane-aligned tile
    n_pad = pl.cdiv(N, n_tile) * n_tile
    num_n_tiles = n_pad // n_tile

    # Layout plumbing (fused by XLA): lane-dense (B, D, N) slab, padded over N.
    pts_t = jnp.transpose(points_1, (0, 2, 1))            # (B, D, N)
    if n_pad != N:
        pts_t = jnp.pad(pts_t, ((0, 0), (0, 0), (0, n_pad - N)))

    # Flattened f32 transform -> SMEM (row-major; no wrapper transpose needed).
    trans_flat = trans_01.astype(jnp.float32).reshape(B, Dp1 * Dp1)

    out_t = pl.pallas_call(
        _transform_points_kernel,
        out_shape=jax.ShapeDtypeStruct((B, D, n_pad), points_1.dtype),
        grid_spec=pltpu.PrefetchScalarGridSpec(
            num_scalar_prefetch=0,
            grid=(B, num_n_tiles),
            in_specs=[
                pl.BlockSpec(memory_space=pltpu.MemorySpace.SMEM),
                pl.BlockSpec((1, D, n_tile), lambda b, n: (b, 0, n)),
            ],
            out_specs=pl.BlockSpec((1, D, n_tile), lambda b, n: (b, 0, n)),
        ),
        compiler_params=pltpu.CompilerParams(
            dimension_semantics=("parallel", "parallel"),
        ),
    )(trans_flat, pts_t)

    out = jnp.transpose(out_t, (0, 2, 1))                 # (B, n_pad, D)
    return out[:, :N, :] if n_pad != N else out


class TransformPoints:
    """JAX/Pallas analogue of tgm.TransformPoints."""

    def __init__(self, dst_homo_src: jax.Array) -> None:
        self.dst_homo_src = dst_homo_src

    def __call__(self, points_src: jax.Array) -> jax.Array:
        return transform_points(self.dst_homo_src, points_src)


def _reference(trans_01, points_1):
    B, N, D = points_1.shape
    pts_h = jnp.concatenate(
        [points_1, jnp.ones((B, N, 1), points_1.dtype)], axis=-1)
    out_h = jnp.einsum("bij,bnj->bni", trans_01, pts_h,
                       precision=jax.lax.Precision.HIGHEST)
    return out_h[..., :D] / out_h[..., D:D + 1]


if __name__ == "__main__":
    key = jax.random.PRNGKey(0)
    k1, k2, k3 = jax.random.split(key, 3)

    B, N, D = 2, 8, 3  # BxNx3 points, Bx4x4 transforms (matches module example)
    points_src = jax.random.normal(k1, (B, N, D), dtype=jnp.float32)
    # Near-identity homogeneous transform so the homogeneous divide is
    # well-conditioned.
    dst_homo_src = (jnp.eye(D + 1, dtype=jnp.float32)[None]
                    + 0.05 * jax.random.normal(k2, (B, D + 1, D + 1),
                                               dtype=jnp.float32))

    transform_op = TransformPoints(dst_homo_src)
    out = jax.block_until_ready(transform_op(points_src))
    ref = _reference(dst_homo_src, points_src)
    assert out.shape == (B, N, D)
    assert jnp.allclose(out, ref, atol=1e-5, rtol=1e-5)

    # Second case exercises N padding and the multi-tile (B, N-tiles) grid path.
    N2 = 300
    points2 = jax.random.normal(k3, (B, N2, D), dtype=jnp.float32)
    out2 = jax.block_until_ready(
        transform_points(dst_homo_src, points2, max_tile=128))
    ref2 = _reference(dst_homo_src, points2)
    assert out2.shape == (B, N2, D)
    assert jnp.allclose(out2, ref2, atol=1e-5, rtol=1e-5)

    print("KERNEL_OK")
</pallas_src>

<mosaic_0001>
module attributes {stable_mosaic.version = 11 : i64} {
  func.func @_transform_points_kernel(%arg0: i32, %arg1: i32, %arg2: memref<2x16xf32, #tpu.memory_space<smem>>, %arg3: memref<1x3x128xf32, #tpu.memory_space<vmem>>, %arg4: memref<1x3x128xf32, #tpu.memory_space<vmem>>) attributes {dimension_semantics = [#tpu.dimension_semantics<parallel>, #tpu.dimension_semantics<parallel>], iteration_bounds = array<i64: 2, 1>, scalar_prefetch = 0 : i64, scratch_operands = 0 : i64, tpu.core_type = #tpu.core_type<tc>, window_params = [{transform_indices = @transform_0, window_bounds = array<i64: 2, 16>}, {transform_indices = @transform_1, window_bounds = array<i64: 1, 3, 128>}, {transform_indices = @transform_2, window_bounds = array<i64: 1, 3, 128>}]} {
    %c0 = arith.constant 0 : index
    %c0_0 = arith.constant 0 : index
    %c0_1 = arith.constant 0 : index
    %0 = vector.load %arg3[%c0, %c0_0, %c0_1] : memref<1x3x128xf32, #tpu.memory_space<vmem>>, vector<1x3x128xf32>
    %1 = vector.shape_cast %0 : vector<1x3x128xf32> to vector<3x128xf32>
    %2 = vector.extract_strided_slice %1 {offsets = [0, 0], sizes = [1, 128], strides = [1, 1]} : vector<3x128xf32> to vector<1x128xf32>
    %3 = vector.extract_strided_slice %1 {offsets = [1, 0], sizes = [1, 128], strides = [1, 1]} : vector<3x128xf32> to vector<1x128xf32>
    %4 = vector.extract_strided_slice %1 {offsets = [2, 0], sizes = [1, 128], strides = [1, 1]} : vector<3x128xf32> to vector<1x128xf32>
    %5 = arith.index_cast %arg0 : i32 to index
    %c12 = arith.constant 12 : index
    %6 = memref.load %arg2[%5, %c12] : memref<2x16xf32, #tpu.memory_space<smem>>
    %7 = vector.broadcast %6 : f32 to vector<1x128xf32>
    %8 = arith.mulf %2, %7 : vector<1x128xf32>
    %9 = arith.index_cast %arg0 : i32 to index
    %c15 = arith.constant 15 : index
    %10 = memref.load %arg2[%9, %c15] : memref<2x16xf32, #tpu.memory_space<smem>>
    %11 = vector.broadcast %10 : f32 to vector<1x128xf32>
    %12 = arith.addf %8, %11 : vector<1x128xf32>
    %13 = arith.index_cast %arg0 : i32 to index
    %c13 = arith.constant 13 : index
    %14 = memref.load %arg2[%13, %c13] : memref<2x16xf32, #tpu.memory_space<smem>>
    %15 = vector.broadcast %14 : f32 to vector<1x128xf32>
    %16 = arith.mulf %3, %15 : vector<1x128xf32>
    %17 = arith.addf %12, %16 : vector<1x128xf32>
    %18 = arith.index_cast %arg0 : i32 to index
    %c14 = arith.constant 14 : index
    %19 = memref.load %arg2[%18, %c14] : memref<2x16xf32, #tpu.memory_space<smem>>
    %20 = vector.broadcast %19 : f32 to vector<1x128xf32>
    %21 = arith.mulf %4, %20 : vector<1x128xf32>
    %22 = arith.addf %17, %21 : vector<1x128xf32>
    %23 = tpu.reciprocal %22 : vector<1x128xf32> -> vector<1x128xf32>
    %24 = arith.index_cast %arg0 : i32 to index
    %c0_2 = arith.constant 0 : index
    %25 = memref.load %arg2[%24, %c0_2] : memref<2x16xf32, #tpu.memory_space<smem>>
    %26 = vector.broadcast %25 : f32 to vector<1x128xf32>
    %27 = arith.mulf %2, %26 : vector<1x128xf32>
    %28 = arith.index_cast %arg0 : i32 to index
    %c3 = arith.constant 3 : index
    %29 = memref.load %arg2[%28, %c3] : memref<2x16xf32, #tpu.memory_space<smem>>
    %30 = vector.broadcast %29 : f32 to vector<1x128xf32>
    %31 = arith.addf %27, %30 : vector<1x128xf32>
    %32 = arith.index_cast %arg0 : i32 to index
    %c1 = arith.constant 1 : index
    %33 = memref.load %arg2[%32, %c1] : memref<2x16xf32, #tpu.memory_space<smem>>
    %34 = vector.broadcast %33 : f32 to vector<1x128xf32>
    %35 = arith.mulf %3, %34 : vector<1x128xf32>
    %36 = arith.addf %31, %35 : vector<1x128xf32>
    %37 = arith.index_cast %arg0 : i32 to index
    %c2 = arith.constant 2 : index
    %38 = memref.load %arg2[%37, %c2] : memref<2x16xf32, #tpu.memory_space<smem>>
    %39 = vector.broadcast %38 : f32 to vector<1x128xf32>
    %40 = arith.mulf %4, %39 : vector<1x128xf32>
    %41 = arith.addf %36, %40 : vector<1x128xf32>
    %42 = arith.mulf %41, %23 : vector<1x128xf32>
    %43 = arith.index_cast %arg0 : i32 to index
    %c4 = arith.constant 4 : index
    %44 = memref.load %arg2[%43, %c4] : memref<2x16xf32, #tpu.memory_space<smem>>
    %45 = vector.broadcast %44 : f32 to vector<1x128xf32>
    %46 = arith.mulf %2, %45 : vector<1x128xf32>
    %47 = arith.index_cast %arg0 : i32 to index
    %c7 = arith.constant 7 : index
    %48 = memref.load %arg2[%47, %c7] : memref<2x16xf32, #tpu.memory_space<smem>>
    %49 = vector.broadcast %48 : f32 to vector<1x128xf32>
    %50 = arith.addf %46, %49 : vector<1x128xf32>
    %51 = arith.index_cast %arg0 : i32 to index
    %c5 = arith.constant 5 : index
    %52 = memref.load %arg2[%51, %c5] : memref<2x16xf32, #tpu.memory_space<smem>>
    %53 = vector.broadcast %52 : f32 to vector<1x128xf32>
    %54 = arith.mulf %3, %53 : vector<1x128xf32>
    %55 = arith.addf %50, %54 : vector<1x128xf32>
    %56 = arith.index_cast %arg0 : i32 to index
    %c6 = arith.constant 6 : index
    %57 = memref.load %arg2[%56, %c6] : memref<2x16xf32, #tpu.memory_space<smem>>
    %58 = vector.broadcast %57 : f32 to vector<1x128xf32>
    %59 = arith.mulf %4, %58 : vector<1x128xf32>
    %60 = arith.addf %55, %59 : vector<1x128xf32>
    %61 = arith.mulf %60, %23 : vector<1x128xf32>
    %62 = arith.index_cast %arg0 : i32 to index
    %c8 = arith.constant 8 : index
    %63 = memref.load %arg2[%62, %c8] : memref<2x16xf32, #tpu.memory_space<smem>>
    %64 = vector.broadcast %63 : f32 to vector<1x128xf32>
    %65 = arith.mulf %2, %64 : vector<1x128xf32>
    %66 = arith.index_cast %arg0 : i32 to index
    %c11 = arith.constant 11 : index
    %67 = memref.load %arg2[%66, %c11] : memref<2x16xf32, #tpu.memory_space<smem>>
    %68 = vector.broadcast %67 : f32 to vector<1x128xf32>
    %69 = arith.addf %65, %68 : vector<1x128xf32>
    %70 = arith.index_cast %arg0 : i32 to index
    %c9 = arith.constant 9 : index
    %71 = memref.load %arg2[%70, %c9] : memref<2x16xf32, #tpu.memory_space<smem>>
    %72 = vector.broadcast %71 : f32 to vector<1x128xf32>
    %73 = arith.mulf %3, %72 : vector<1x128xf32>
    %74 = arith.addf %69, %73 : vector<1x128xf32>
    %75 = arith.index_cast %arg0 : i32 to index
    %c10 = arith.constant 10 : index
    %76 = memref.load %arg2[%75, %c10] : memref<2x16xf32, #tpu.memory_space<smem>>
    %77 = vector.broadcast %76 : f32 to vector<1x128xf32>
    %78 = arith.mulf %4, %77 : vector<1x128xf32>
    %79 = arith.addf %74, %78 : vector<1x128xf32>
    %80 = arith.mulf %79, %23 : vector<1x128xf32>
    %81 = tpu.concatenate %42, %61, %80 in 0 : vector<1x128xf32>, vector<1x128xf32>, vector<1x128xf32> -> vector<3x128xf32>
    %c0_3 = arith.constant 0 : index
    %c0_4 = arith.constant 0 : index
    %c0_5 = arith.constant 0 : index
    %82 = vector.load %arg4[%c0_3, %c0_4, %c0_5] : memref<1x3x128xf32, #tpu.memory_space<vmem>>, vector<1x3x128xf32>
    %83 = vector.shape_cast %82 : vector<1x3x128xf32> to vector<3x128xf32>
    %84 = vector.shape_cast %81 : vector<3x128xf32> to vector<1x3x128xf32>
    tpu.vector_store %arg4[%c0_3, %c0_4, %c0_5], %84 {strides = array<i32>} : memref<1x3x128xf32, #tpu.memory_space<vmem>>, vector<1x3x128xf32>,
    return
  }
  func.func @transform_0(%arg0: i32, %arg1: i32) -> (i32, i32) {
    %c0_i32 = arith.constant 0 : i32
    %c0_i32_0 = arith.constant 0 : i32
    %c0_i32_1 = arith.constant 0 : i32
    return %c0_i32, %c0_i32_0 : i32, i32
  }
  func.func @transform_1(%arg0: i32, %arg1: i32) -> (i32, i32, i32) {
    %c0_i32 = arith.constant 0 : i32
    %c0_i32_0 = arith.constant 0 : i32
    return %arg0, %c0_i32, %arg1 : i32, i32, i32
  }
  func.func @transform_2(%arg0: i32, %arg1: i32) -> (i32, i32, i32) {
    %c0_i32 = arith.constant 0 : i32
    %c0_i32_0 = arith.constant 0 : i32
    return %arg0, %c0_i32, %arg1 : i32, i32, i32
  }
}

</mosaic_0001>

<bundles_post_ra>
// kernel: transform_points.1
= control target key start
LH: loop header
LB: loop body
LE: loop exit
PB: predicated region body
PF: predicated region fallthrough
CT: control target
= control target key end

     0   :  { %7 = vsyncpa [#allocation3], 0  ;;  %s491_s9 = smov 0   ;;  %s493_s10 = smov 0   ;;  %s596_s0 = inlined_call_operand.vmem [shape: f32[2,16], index: 0, kind: input, shape index: {}]   ;;  %s597_s1 = inlined_call_operand.vmem [shape: f32[2,3,128], index: 1, kind: input, shape index: {}]   ;;  %s598_s2 = inlined_call_operand.vmem [shape: f32[2,3,128], index: 2, kind: output, shape index: {}]  }
   0x1   :  { %s495_s11 = smov 0  }
   0x2 LB: > { %s383_s12 = sadd.s32 4294967295, %s473_s11   ;;  %s25_s13 = sadd.s32 1, %s469_s10  ;;  %s473_s11 = sphi %s495_s11, %s13_s11   ;;  %s469_s10 = sphi %s493_s10, %s602_s10   ;;  %s465_s9 = sphi %s491_s9, %s601_s9  }
   0x3   : > { %p27_p0 = scmp.ge.s32.totalorder %s25_s13, 2  ;;  %p385_p1 = scmp.ge.s32.totalorder %s473_s11, 1 }
   0x4   : > { %p107_p2 = scmp.lt.s32.totalorder %s473_s11, 3  ;;  %p516_p4 = scmp.eq.s32.totalorder %s383_s12, 0 }
   0x5   : > { %s604_s13 = smov (%p27_p0, %s25_s13), 0  ;;  %s120_s18 = sshll.u32 %s596_s0, 4  ;;  %s121_s18 = int_to_ptr.vmem [resolvable:$true] %s120_s18 }
   0x6   : > { %p512_p3 = pnand %p385_p1, %p107_p2  ;;  %s432_s19 = scalar_lea.vmem %s121_s18, 32 }
   0x7   : > { %p433_p7 = scmp.ne.s32.totalorder %s121_s18, %s432_s19  ;;  %p440_p11 = scmp.lt.s32.totalorder %s121_s18, %s121_s18 }
   0x8   : > { %p399_p5 = pneg %p512_p3  ;;  %p441_p12 = scmp.lt.s32.totalorder %s432_s19, %s432_s19 }
   0xa   : > { %p400_p6 = pnand %p516_p4, %p399_p5  ;;  %p442_p13 = por %p441_p12, %p440_p11 }
   0xc   : > { %p434_p8 = pneg %p400_p6 }
   0xe   : > { %p435_p9 = pnand %p434_p8, %p433_p7 }
  0x10   : > { %p436_p10 = pneg %p435_p9 }
  0x12   : > { %p443_p0 = pnand %p442_p13, %p436_p10 }
  0x14   : > { %446 = shalt.err (!%p443_p0)
}
  0x15   : > { %s475_s20 = smov [#allocation2]   ;;  %143 = sbr.rel (%p512_p3) target bundleno = 69 (0x45), region = 28 }
  0x16   : > { %402 = dma.vmem_to_smem (!%p400_p6), %s121_s18, 32, %s475_s20, [#allocation3]  }
  0x1c   : > { %460 = dma.done.wait (%p516_p4), [#allocation3], 32  }
  0x1d   : > { %462 = vsyncadd (%p516_p4), [#allocation3], 4294967264 }
  0x1e   : > { %149 = sfence }
  0x1f   : > { %p170_p1 = scmp.lt.s32.totalorder %s465_s9, 1  ;;  %s535_s21 = sshll.u32 %s465_s9, 7  ;;  %vm291_vm0 = vcmask 1040384   ;;  %vm293_vm1 = vcmask 1041408  }
  0x20   : > { %s186_s22 = sadd.s32 12, %s535_s21  ;;  %s190_s23 = sadd.s32 15, %s535_s21 }
  0x21   : > { %s606_s9 = smov (!%p170_p1, %s465_s9), 1  ;;  %s187_s24 = sld [smem:[#allocation2 + %s186_s22]] }
  0x22   : > { %s191_s25 = sld [smem:[#allocation2 + %s190_s23]]  ;;  %s390_s26 = sshll.u32 %s606_s9, 2 }
  0x23   : > { %s194_s27 = sadd.s32 13, %s535_s21  ;;  %s176_s30 = scalar_lea.vmem %s597_s1, %s390_s26 }
  0x24   : > { %s195_s3 = sld [smem:[#allocation2 + %s194_s27]]  ;;  %s202_s4 = sadd.s32 14, %s535_s21  ;;  %v550_v0 = vld [vmem:[%s176_s30] sm:$0x7] }
  0x25   : > { %s203_s5 = sld [smem:[#allocation2 + %s202_s4]]  ;;  %s214_s7 = sadd.s32 3, %s535_s21 }
  0x26   : > { %s211_s6 = sld [smem:[#allocation2 + %s535_s21]]  ;;  %s218_s8 = sadd.s32 1, %s535_s21 }
  0x27   : > { %v188_v1 = vstv %s187_s24  ;;  %s555_s12 = sld [smem:[#allocation2 + %s214_s7]]  ;;  %s226_s15 = sadd.s32 2, %s535_s21 }
  0x28   : > { %s219_s14 = sld [smem:[#allocation2 + %s218_s8]]  ;;  %v189_v2 = vmul.f32 %v188_v1, %v550_v0  ;;  %v192_v3 = vstv %s191_s25  ;;  %s235_s16 = sadd.s32 4, %s535_s21 }
  0x29   : > { %s560_s17 = sld [smem:[#allocation2 + %s226_s15]]  ;;  %s239_s19 = sadd.s32 7, %s535_s21 }
  0x2a   : > { %s236_s18 = sld [smem:[#allocation2 + %s235_s16]]  ;;  %v196_v4 = vstv %s195_s3  ;;  %s243_s20 = sadd.s32 5, %s535_s21  ;;  %v193_v5 = vadd.f32 %v192_v3, %v189_v2 }
  0x2b   : > { %v197_v6 = vmul.f32 %v196_v4, %v550_v0  ;;  %v204_v7 = vstv %s203_s5  ;;  %s240_s22 = sld [smem:[#allocation2 + %s239_s19]]  ;;  %s251_s24 = sadd.s32 6, %s535_s21 }
  0x2c   : > { %v212_v8 = vstv %s211_s6  ;;  %s244_s23 = sld [smem:[#allocation2 + %s243_s20]]  ;;  %v205_v9 = vmul.f32 %v204_v7, %v550_v0  ;;  %s260_s25 = sadd.s32 8, %s535_s21 }
  0x2d   : > { %v213_v10 = vmul.f32 %v212_v8, %v550_v0  ;;  %v199_v11 = vrot.slane %v197_v6, 1  ;;  %v216_v12 = vstv %s555_s12  ;;  %s252_s27 = sld [smem:[#allocation2 + %s251_s24]]  ;;  %s264_s29 = sadd.s32 11, %s535_s21 }
  0x2e   : > { %v220_v13 = vstv %s219_s14  ;;  %s261_s28 = sld [smem:[#allocation2 + %s260_s25]]  ;;  %v207_v14 = vrot.slane %v205_v9, 2  ;;  %s268_s30 = sadd.s32 9, %s535_s21 }
  0x2f   : > { %v221_v15 = vmul.f32 %v220_v13, %v550_v0  ;;  %v201_v16 = vadd.f32 %v199_v11, %v193_v5  ;;  %v228_v17 = vstv %s560_s17  ;;  %s265_s3 = sld [smem:[#allocation2 + %s264_s29]]  ;;  %v217_v19 = vadd.f32 %v216_v12, %v213_v10  ;;  %s276_s5 = sadd.s32 10, %s535_s21 }
  0x30   : > { %v237_v18 = vstv %s236_s18  ;;  %s269_s4 = sld [smem:[#allocation2 + %s268_s30]]  ;;  %v229_v23 = vmul.f32 %v228_v17, %v550_v0  ;;  %s183_s8 = scalar_lea.vmem %s598_s2, %s390_s26 }
  0x31   : > { %v223_v20 = vrot.slane %v221_v15, 1  ;;  %v238_v21 = vmul.f32 %v237_v18, %v550_v0  ;;  %v209_v22 = vadd.f32 %v207_v14, %v201_v16  ;;  %v241_v24 = vstv %s240_s22  ;;  %s277_s6 = sld [smem:[#allocation2 + %s276_s5]] }
  0x32   : > { %v245_v25 = vstv %s244_s23  ;;  %v231_v34 = vrot.slane %v229_v23, 2 }
  0x33   : > { %v242_v26 = vadd.f32 %v241_v24, %v238_v21  ;;  %v246_v27 = vmul.f32 %v245_v25, %v550_v0  ;;  %430 = vrcp.f32 %v209_v22  ;;  %v253_v28 = vstv %s252_s27 }
  0x34   : > { %v262_v29 = vstv %s261_s28  ;;  %v254_v31 = vmul.f32 %v253_v28, %v550_v0  ;;  %v225_v33 = vadd.f32 %v223_v20, %v217_v19 }
  0x35   : > { %v248_v30 = vrot.slane %v246_v27, 1  ;;  %v263_v32 = vmul.f32 %v262_v29, %v550_v0  ;;  %v266_v35 = vstv %s265_s3 }
  0x36   : > { %v270_v36 = vstv %s269_s4  ;;  %v256_v38 = vrot.slane %v254_v31, 2  ;;  %v233_v44 = vadd.f32 %v231_v34, %v225_v33 }
  0x37   : > { %v250_v37 = vadd.f32 %v248_v30, %v242_v26  ;;  %v267_v39 = vadd.f32 %v266_v35, %v263_v32  ;;  %v271_v40 = vmul.f32 %v270_v36, %v550_v0  ;;  %v278_v41 = vstv %s277_s6 }
  0x38   : > { %v279_v43 = vmul.f32 %v278_v41, %v550_v0 }
  0x39   : > { %v273_v42 = vrot.slane %v271_v40, 1  ;;  %v258_v45 = vadd.f32 %v256_v38, %v250_v37 }
  0x3a   : > { %v281_v47 = vrot.slane %v279_v43, 2 }
  0x3b   : > { %v275_v46 = vadd.f32 %v273_v42, %v267_v39 }
  0x3d   : > { %v283_v48 = vadd.f32 %v281_v47, %v275_v46  ;;  %v431_v49 = vpop.eup %430 }
  0x3e   : > { %v234_v50 = vmul.f32 %v431_v49, %v233_v44  ;;  %v259_v51 = vmul.f32 %v431_v49, %v258_v45 }
  0x3f   : > { %v284_v52 = vmul.f32 %v431_v49, %v283_v48 }
  0x40   : > { %v286_v53 = vrot.slane %v259_v51, 7 }
  0x41   : > { %v289_v54 = vrot.slane %v284_v52, 6 }
  0x42   : > { %v292_v55 = vsel %vm291_vm0, %v234_v50, %v286_v53 }
  0x43   : > { %v294_v56 = vsel %vm293_vm1, %v292_v55, %v289_v54 }
  0x44   : > { %295 = vst [vmem:[%s183_s8] sm:$0x7] %v294_v56 }
  0x45 PF: > { %s13_s11 = sadd.s32 1, %s473_s11   ;;  %s601_s9 = smov %s469_s10 }
  0x46   : > { %p10_p2 = scmp.ge.s32.totalorder %s13_s11, 4   ;;  %s602_s10 = smov %s604_s13 }
  0x48   :  { %12 = sbr.rel (!%p10_p2) target bundleno = 2 (0x2), region = 63 }
  0x4f   :  { %321 = vsyncpa [#allocation3], 1 }
  0x50   :  { %323 = vsyncpa [#allocation3 + $0x1], 1 }

</bundles_post_ra>
